<compile_context>
chip_gen: v7x
topology: tpu7x:2x2x1
jax: 0.10.0
libtpu: 0.0.40
codegen_flags: <defaults>
</compile_context>

<pallas_src>
import functools

import jax
import jax.numpy as jnp
from jax import lax
from jax.experimental import pallas as pl
from jax.experimental.pallas import tpu as pltpu


def _conv1d_circular(x_ref, w_ref, b_ref, L):
    """k=3 circular Conv1d on an (L+2, C) padded row block -> (L, C) f32."""
    y = jnp.dot(x_ref[0:L, :], w_ref[0], preferred_element_type=jnp.float32)
    y = y + jnp.dot(x_ref[1:L + 1, :], w_ref[1], preferred_element_type=jnp.float32)
    y = y + jnp.dot(x_ref[2:L + 2, :], w_ref[2], preferred_element_type=jnp.float32)
    return y + b_ref[...]


def stats_kernel(x_ref, w_ref, b_ref, bmean_ref, bm2_ref, *, L, C):
    # Per-batch BatchNorm statistics (mean and centered sum of squares), one pass.
    y = _conv1d_circular(x_ref, w_ref, b_ref, L)          # (L, C)
    bmean = jnp.mean(y, axis=0, keepdims=True)             # (1, C)
    d = y - bmean
    bmean_ref[...] = bmean
    bm2_ref[...] = jnp.sum(d * d, axis=0, keepdims=True)   # (1, C)


def norm_pool_kernel(x_ref, w_ref, b_ref, scale_ref, shift_ref, out_ref, zs_ref,
                     *, L, C, L_out):
    # Recompute conv, apply folded BN affine, ELU, then MaxPool1d(3,2,1).
    y = _conv1d_circular(x_ref, w_ref, b_ref, L)           # (L, C)
    z = y * scale_ref[...] + shift_ref[...]                 # BN as z = y*scale + shift
    z = jnp.where(z > 0, z, jnp.exp(jnp.minimum(z, 0.0)) - 1.0)   # ELU (alpha=1)

    # Stage z in VMEM with an 8-row -inf guard band so the j=0 window's "z[-1]"
    # reads -inf (PyTorch maxpool padding semantics), then take three stride-2 views.
    neg_inf = jnp.float32(-jnp.inf)
    zs_ref[0:8, :] = jnp.full((8, C), neg_inf, jnp.float32)
    zs_ref[8:8 + L, :] = z
    prev = zs_ref[pl.ds(7, L_out, stride=2), :]   # z[2j-1]  (-inf at j=0)
    even = zs_ref[pl.ds(8, L_out, stride=2), :]   # z[2j]
    odd = zs_ref[pl.ds(9, L_out, stride=2), :]    # z[2j+1]
    out_ref[...] = jnp.maximum(jnp.maximum(prev, even), odd)


def conv_layer_forward(x, w, b, gamma, beta):
    """x: (B, L, C) f32; w: (C, C, 3) torch Conv1d layout (out, in, k); b/gamma/beta: (C,)."""
    B, L, C = x.shape
    assert L % 8 == 0, "seq length must be a multiple of 8 for aligned in-kernel slices"
    L_out = (L - 1) // 2 + 1          # == L // 2 for even L
    f32 = jnp.float32

    # Glue (plain JAX, tiny): circular pad (+2 rows) and conv-tap weight re-layout.
    xpad = jnp.concatenate([x[:, -1:, :], x, x[:, :1, :]], axis=1).astype(f32)  # (B, L+2, C)
    wt = jnp.transpose(w, (2, 1, 0)).astype(f32)   # (3, C, C); wt[k, i, o] = w[o, i, k]
    b2 = b.reshape(1, C).astype(f32)

    xpad_spec = pl.BlockSpec((None, L + 2, C), lambda bi: (bi, 0, 0))
    w_spec = pl.BlockSpec((3, C, C), lambda bi: (0, 0, 0))
    vec_spec = pl.BlockSpec((1, C), lambda bi: (0, 0))
    cparams = pltpu.CompilerParams(dimension_semantics=("parallel",))

    # Pass 1: conv + per-batch BN statistics.
    bmean, bm2 = pl.pallas_call(
        functools.partial(stats_kernel, L=L, C=C),
        out_shape=(jax.ShapeDtypeStruct((B, 1, C), f32),
                   jax.ShapeDtypeStruct((B, 1, C), f32)),
        grid=(B,),
        in_specs=[xpad_spec, w_spec, vec_spec],
        out_specs=(pl.BlockSpec((None, 1, C), lambda bi: (bi, 0, 0)),
                   pl.BlockSpec((None, 1, C), lambda bi: (bi, 0, 0))),
        compiler_params=cparams,
    )(xpad, wt, b2)

    # Combine per-batch stats (Chan/Welford merge) and fold BN into scale/shift (f32, tiny).
    bmean = bmean[:, 0, :]                                   # (B, C)
    bm2 = bm2[:, 0, :]                                       # (B, C)
    mean = jnp.mean(bmean, axis=0)                           # (C,)
    m2 = jnp.sum(bm2, axis=0) + L * jnp.sum((bmean - mean) ** 2, axis=0)
    var = m2 / (B * L)                                       # biased var (training-mode BN)
    scale = (gamma.astype(f32) * lax.rsqrt(var + 1e-5)).reshape(1, C)
    shift = beta.astype(f32).reshape(1, C) - mean.reshape(1, C) * scale

    # Pass 2: conv (recomputed) + BN affine + ELU + MaxPool.
    out = pl.pallas_call(
        functools.partial(norm_pool_kernel, L=L, C=C, L_out=L_out),
        out_shape=jax.ShapeDtypeStruct((B, L_out, C), f32),
        grid=(B,),
        in_specs=[xpad_spec, w_spec, vec_spec, vec_spec, vec_spec],
        out_specs=pl.BlockSpec((None, L_out, C), lambda bi: (bi, 0, 0)),
        scratch_shapes=[pltpu.VMEM((L + 8, C), f32)],
        compiler_params=cparams,
    )(xpad, wt, b2, scale, shift)
    return out


def ref_forward(x, w, b, gamma, beta):
    """Pure-JAX reference mirroring the PyTorch module (training-mode BatchNorm)."""
    B, L, C = x.shape
    xt = jnp.transpose(x, (0, 2, 1))                                        # (B, C, L)
    xp = jnp.concatenate([xt[..., -1:], xt, xt[..., :1]], axis=-1)          # circular pad
    y = jnp.zeros((B, C, L), jnp.float32)
    for k in range(3):
        y = y + jnp.einsum('oi,bil->bol', w[:, :, k], xp[..., k:k + L])
    y = y + b[None, :, None]
    mean = jnp.mean(y, axis=(0, 2), keepdims=True)
    var = jnp.mean((y - mean) ** 2, axis=(0, 2), keepdims=True)
    z = (y - mean) / jnp.sqrt(var + 1e-5) * gamma[None, :, None] + beta[None, :, None]
    z = jnp.where(z > 0, z, jnp.exp(jnp.minimum(z, 0.0)) - 1.0)
    zp = jnp.pad(z, ((0, 0), (0, 0), (1, 1)), constant_values=-jnp.inf)
    L_out = (L - 1) // 2 + 1
    windows = jnp.stack([zp[..., d:d + 2 * (L_out - 1) + 1:2] for d in range(3)], axis=-1)
    pooled = jnp.max(windows, axis=-1)                                      # (B, C, L_out)
    return jnp.transpose(pooled, (0, 2, 1))                                 # (B, L_out, C)


if __name__ == "__main__":
    key = jax.random.PRNGKey(0)
    B, L, C = 2, 16, 4
    k1, k2, k3, k4, k5 = jax.random.split(key, 5)

    x = jax.random.normal(k1, (B, L, C), dtype=jnp.float32)

    # Deterministic synthetic parameters (shapes from the module's __init__).
    fan_in = C * 3
    bound = 1.0 / (fan_in ** 0.5)
    w = jax.random.uniform(k2, (C, C, 3), minval=-bound, maxval=bound, dtype=jnp.float32)
    b = jax.random.uniform(k3, (C,), minval=-bound, maxval=bound, dtype=jnp.float32)
    gamma = 1.0 + 0.1 * jax.random.normal(k4, (C,), dtype=jnp.float32)
    beta = 0.1 * jax.random.normal(k5, (C,), dtype=jnp.float32)

    out = conv_layer_forward(x, w, b, gamma, beta)
    out = jax.block_until_ready(out)

    L_out = (L - 1) // 2 + 1
    assert out.shape == (B, L_out, C), out.shape

    ref = ref_forward(x, w, b, gamma, beta)
    if not bool(jnp.allclose(out, ref, atol=1e-4, rtol=1e-4)):
        raise AssertionError("Pallas kernel output mismatch vs JAX reference")

    print("KERNEL_OK")
</pallas_src>

<mosaic_0001>
module attributes {stable_mosaic.version = 11 : i64} {
  func.func @stats_kernel(%arg0: i32, %arg1: memref<1x18x4xf32, #tpu.memory_space<vmem>>, %arg2: memref<3x4x4xf32, #tpu.memory_space<vmem>>, %arg3: memref<1x4xf32, #tpu.memory_space<vmem>>, %arg4: memref<1x1x4xf32, #tpu.memory_space<vmem>>, %arg5: memref<1x1x4xf32, #tpu.memory_space<vmem>>) attributes {dimension_semantics = [#tpu.dimension_semantics<parallel>], iteration_bounds = array<i64: 2>, scalar_prefetch = 0 : i64, scratch_operands = 0 : i64, tpu.core_type = #tpu.core_type<tc>, window_params = [{transform_indices = @transform_0, window_bounds = array<i64: 1, 18, 4>}, {pipeline_mode = #tpu.pipeline_mode<synchronous>, transform_indices = @transform_1, window_bounds = array<i64: 3, 4, 4>}, {pipeline_mode = #tpu.pipeline_mode<synchronous>, transform_indices = @transform_2, window_bounds = array<i64: 1, 4>}, {transform_indices = @transform_3, window_bounds = array<i64: 1, 1, 4>}, {transform_indices = @transform_4, window_bounds = array<i64: 1, 1, 4>}]} {
    %c0 = arith.constant 0 : index
    %c0_0 = arith.constant 0 : index
    %c0_1 = arith.constant 0 : index
    %0 = vector.load %arg1[%c0, %c0_0, %c0_1] : memref<1x18x4xf32, #tpu.memory_space<vmem>>, vector<1x16x4xf32>
    %1 = vector.shape_cast %0 : vector<1x16x4xf32> to vector<16x4xf32>
    %c0_2 = arith.constant 0 : index
    %c0_3 = arith.constant 0 : index
    %c0_4 = arith.constant 0 : index
    %2 = vector.load %arg2[%c0_2, %c0_3, %c0_4] : memref<3x4x4xf32, #tpu.memory_space<vmem>>, vector<1x4x4xf32>
    %3 = vector.shape_cast %2 : vector<1x4x4xf32> to vector<4x4xf32>
    %cst = arith.constant dense<0.000000e+00> : vector<16x4xf32>
    %4 = tpu.matmul %1, %3, %cst {dimension_numbers = #tpu.dot_dimension_numbers<[1], [0], [0], [1], [0, 0, 1, 1], [], []>} : vector<16x4xf32>, vector<4x4xf32>, vector<16x4xf32> -> vector<16x4xf32>
    %c0_5 = arith.constant 0 : index
    %c1 = arith.constant 1 : index
    %c0_6 = arith.constant 0 : index
    %5 = vector.load %arg1[%c0_5, %c1, %c0_6] : memref<1x18x4xf32, #tpu.memory_space<vmem>>, vector<1x16x4xf32>
    %6 = vector.shape_cast %5 : vector<1x16x4xf32> to vector<16x4xf32>
    %c1_7 = arith.constant 1 : index
    %c0_8 = arith.constant 0 : index
    %c0_9 = arith.constant 0 : index
    %7 = vector.load %arg2[%c1_7, %c0_8, %c0_9] : memref<3x4x4xf32, #tpu.memory_space<vmem>>, vector<1x4x4xf32>
    %8 = vector.shape_cast %7 : vector<1x4x4xf32> to vector<4x4xf32>
    %cst_10 = arith.constant dense<0.000000e+00> : vector<16x4xf32>
    %9 = tpu.matmul %6, %8, %cst_10 {dimension_numbers = #tpu.dot_dimension_numbers<[1], [0], [0], [1], [0, 0, 1, 1], [], []>} : vector<16x4xf32>, vector<4x4xf32>, vector<16x4xf32> -> vector<16x4xf32>
    %10 = arith.addf %4, %9 : vector<16x4xf32>
    %c0_11 = arith.constant 0 : index
    %c2 = arith.constant 2 : index
    %c0_12 = arith.constant 0 : index
    %11 = vector.load %arg1[%c0_11, %c2, %c0_12] : memref<1x18x4xf32, #tpu.memory_space<vmem>>, vector<1x16x4xf32>
    %12 = vector.shape_cast %11 : vector<1x16x4xf32> to vector<16x4xf32>
    %c2_13 = arith.constant 2 : index
    %c0_14 = arith.constant 0 : index
    %c0_15 = arith.constant 0 : index
    %13 = vector.load %arg2[%c2_13, %c0_14, %c0_15] : memref<3x4x4xf32, #tpu.memory_space<vmem>>, vector<1x4x4xf32>
    %14 = vector.shape_cast %13 : vector<1x4x4xf32> to vector<4x4xf32>
    %cst_16 = arith.constant dense<0.000000e+00> : vector<16x4xf32>
    %15 = tpu.matmul %12, %14, %cst_16 {dimension_numbers = #tpu.dot_dimension_numbers<[1], [0], [0], [1], [0, 0, 1, 1], [], []>} : vector<16x4xf32>, vector<4x4xf32>, vector<16x4xf32> -> vector<16x4xf32>
    %16 = arith.addf %10, %15 : vector<16x4xf32>
    %c0_17 = arith.constant 0 : index
    %c0_18 = arith.constant 0 : index
    %17 = vector.load %arg3[%c0_17, %c0_18] : memref<1x4xf32, #tpu.memory_space<vmem>>, vector<1x4xf32>
    %18 = vector.broadcast %17 : vector<1x4xf32> to vector<16x4xf32>
    %19 = arith.addf %16, %18 : vector<16x4xf32>
    %cst_19 = arith.constant dense<0.000000e+00> : vector<4xf32>
    %20 = vector.multi_reduction <add>, %19, %cst_19 [0] : vector<16x4xf32> to vector<4xf32>
    %21 = vector.shape_cast %20 : vector<4xf32> to vector<1x4xf32>
    %cst_20 = arith.constant 1.600000e+01 : f32
    %22 = vector.broadcast %cst_20 : f32 to vector<1x4xf32>
    %23 = arith.divf %21, %22 : vector<1x4xf32>
    %24 = vector.broadcast %23 : vector<1x4xf32> to vector<16x4xf32>
    %25 = arith.subf %19, %24 : vector<16x4xf32>
    %c0_21 = arith.constant 0 : index
    %c0_22 = arith.constant 0 : index
    %c0_23 = arith.constant 0 : index
    %26 = vector.load %arg4[%c0_21, %c0_22, %c0_23] : memref<1x1x4xf32, #tpu.memory_space<vmem>>, vector<1x1x4xf32>
    %27 = vector.shape_cast %26 : vector<1x1x4xf32> to vector<1x4xf32>
    %28 = vector.shape_cast %23 : vector<1x4xf32> to vector<1x1x4xf32>
    tpu.vector_store %arg4[%c0_21, %c0_22, %c0_23], %28 {strides = array<i32>} : memref<1x1x4xf32, #tpu.memory_space<vmem>>, vector<1x1x4xf32>,
    %29 = arith.mulf %25, %25 : vector<16x4xf32>
    %cst_24 = arith.constant dense<0.000000e+00> : vector<4xf32>
    %30 = vector.multi_reduction <add>, %29, %cst_24 [0] : vector<16x4xf32> to vector<4xf32>
    %31 = vector.shape_cast %30 : vector<4xf32> to vector<1x4xf32>
    %c0_25 = arith.constant 0 : index
    %c0_26 = arith.constant 0 : index
    %c0_27 = arith.constant 0 : index
    %32 = vector.load %arg5[%c0_25, %c0_26, %c0_27] : memref<1x1x4xf32, #tpu.memory_space<vmem>>, vector<1x1x4xf32>
    %33 = vector.shape_cast %32 : vector<1x1x4xf32> to vector<1x4xf32>
    %34 = vector.shape_cast %31 : vector<1x4xf32> to vector<1x1x4xf32>
    tpu.vector_store %arg5[%c0_25, %c0_26, %c0_27], %34 {strides = array<i32>} : memref<1x1x4xf32, #tpu.memory_space<vmem>>, vector<1x1x4xf32>,
    return
  }
  func.func @transform_0(%arg0: i32) -> (i32, i32, i32) {
    %c0_i32 = arith.constant 0 : i32
    %c0_i32_0 = arith.constant 0 : i32
    %c0_i32_1 = arith.constant 0 : i32
    return %arg0, %c0_i32, %c0_i32_0 : i32, i32, i32
  }
  func.func @transform_1(%arg0: i32) -> (i32, i32, i32) {
    %c0_i32 = arith.constant 0 : i32
    %c0_i32_0 = arith.constant 0 : i32
    %c0_i32_1 = arith.constant 0 : i32
    %c0_i32_2 = arith.constant 0 : i32
    return %c0_i32, %c0_i32_0, %c0_i32_1 : i32, i32, i32
  }
  func.func @transform_2(%arg0: i32) -> (i32, i32) {
    %c0_i32 = arith.constant 0 : i32
    %c0_i32_0 = arith.constant 0 : i32
    %c0_i32_1 = arith.constant 0 : i32
    return %c0_i32, %c0_i32_0 : i32, i32
  }
  func.func @transform_3(%arg0: i32) -> (i32, i32, i32) {
    %c0_i32 = arith.constant 0 : i32
    %c0_i32_0 = arith.constant 0 : i32
    %c0_i32_1 = arith.constant 0 : i32
    return %arg0, %c0_i32, %c0_i32_0 : i32, i32, i32
  }
  func.func @transform_4(%arg0: i32) -> (i32, i32, i32) {
    %c0_i32 = arith.constant 0 : i32
    %c0_i32_0 = arith.constant 0 : i32
    %c0_i32_1 = arith.constant 0 : i32
    return %arg0, %c0_i32, %c0_i32_0 : i32, i32, i32
  }
}

</mosaic_0001>

<bundles_post_ra>
// kernel: tpu_custom_call.1
= control target key start
LH: loop header
LB: loop body
LE: loop exit
PB: predicated region body
PF: predicated region fallthrough
CT: control target
= control target key end

     0   :  { %10 = vsyncpa [#allocation3], 0  ;;  %s1006_s0 = inlined_call_operand.vmem [shape: f32[2,18,4], index: 0, kind: input, shape index: {}]   ;;  %s1007_s1 = inlined_call_operand.vmem [shape: f32[3,4,4], index: 1, kind: input, shape index: {}]   ;;  %s1008_s2 = inlined_call_operand.vmem [shape: f32[1,4], index: 2, kind: input, shape index: {}]   ;;  %s1009_s3 = inlined_call_operand.hbm [shape: f32[2,1,4], index: 3, kind: output, shape index: {0}]   ;;  %s1010_s4 = inlined_call_operand.hbm [shape: f32[2,1,4], index: 4, kind: output, shape index: {1}]  }
   0x1   :  { %12 = vsyncpa [#allocation3 + $0x1], 0 }
   0x2   :  { %13 = vsyncpa [#allocation5], 0 }
   0x3   :  { %15 = vsyncpa [#allocation5 + $0x1], 0  ;;  %s838_s15 = smov 0   ;;  %s840_s16 = smov 0  }
   0x4   :  { %s842_s17 = smov 0   ;;  %s844_s18 = smov 0  }
   0x5 LB: > { %s859_s19 = sadd.s32 4294967295, %s809_s18   ;;  %s621_s20 = sadd.s32 4294967294, %s809_s18   ;;  %s809_s18 = sphi %s844_s18, %s1016_s18   ;;  %s805_s17 = sphi %s842_s17, %s1015_s17   ;;  %s801_s16 = sphi %s840_s16, %s1014_s16   ;;  %s797_s15 = sphi %s838_s15, %s1013_s15  }
   0x6   : > { %s863_s21 = sadd.s32 1, %s809_s18   ;;  %s96_s22 = sadd.s32 1, %s805_s17 }
   0x7   : > { %s93_s23 = ssub.s32 %s809_s18, %s863_s21  ;;  %p106_p0 = scmp.ne.s32.totalorder %s805_s17, %s801_s16 }
   0x8   : > { %p94_p1 = scmp.eq.s32.totalorder %s93_s23, 0  ;;  %p107_p2 = scmp.eq.s32.totalorder %s859_s19, 1 }
   0x9   : > { %p112_p3 = scmp.ne.s32.totalorder %s801_s16, %s797_s15  ;;  %p113_p4 = scmp.eq.s32.totalorder %s621_s20, 1 }
   0xa   : > { %s874_s24 = scalar_select %p94_p1, %s805_s17, %s96_s22  }
   0xb   : > { %p876_p5 = por %p107_p2, %p106_p0  ;;  %p880_p6 = por %p113_p4, %p112_p3 }
   0xc   : > { %p624_p7 = scmp.ge.s32.totalorder %s809_s18, 1  ;;  %p171_p8 = scmp.lt.s32.totalorder %s809_s18, 3 }
   0xe   : > { %p172_p9 = pnand %p624_p7, %p171_p8 }
   0xf   : > { %v207_v0 = vld [vmem:[%s1007_s1] sm:$0xf] (!%p172_p9)  ;;  %vm219_vm0 = vcmask (!%p172_p9), 1043456   ;;  %p200_p10 = scmp.lt.s32.totalorder (!%p172_p9), %s859_s19, 1  ;;  %v633_v1 = vld [vmem:[%s1007_s1 + $0x8] sm:$0xf] (!%p172_p9) }
  0x10   : > { %175 = sbr.rel (%p172_p9) target bundleno = 316 (0x13c), region = 32  ;;  %656 = vmatprep.subr.msk.mxu0 (!%p172_p9), %vm219_vm0, %v207_v0  ;;  %v626_v2 = vld [vmem:[%s1007_s1 + $0x4] sm:$0xf] (!%p172_p9)  ;;  %vm212_vm1 = vcmask (!%p172_p9), 31744   ;;  %v637_v12 = vld [vmem:[%s1008_s2] ss:$0 sm:$0xff] (!%p172_p9) }
  0x11   : > { %657 = vmatpush3.msk.msra.mxu0 (!%p172_p9), %vm219_vm0, %v207_v0  ;;  %651 = vmatprep.subr.msk.mxu1 (!%p172_p9), %vm219_vm0, %v626_v2  ;;  %s918_s14 = sand.u32 (!%p172_p9), 1, %s801_s16   ;;  %s638_s20 = sshll.u32 (!%p172_p9), %s859_s19, 4  ;;  %vm494_vm2 = vcmask (!%p172_p9), 24576  }
  0x12   : > { %661 = vmatprep.subr.msk.mxu0 (!%p172_p9), %vm219_vm0, %v633_v1  ;;  %652 = vmatpush3.msk.msra.mxu1 (!%p172_p9), %vm219_vm0, %v626_v2  ;;  %s193_s22 = scalar_lea.vmem (!%p172_p9), [#allocation2], %s918_s14  ;;  %s927_s29 = scalar_lea.hbm (!%p172_p9), %s1009_s3, %s638_s20 }
  0x13   : > { %s525_s23 = sshll.u32 (!%p172_p9), %s193_s22, 4  ;;  %s509_s30 = scalar_lea.sflag (!%p172_p9), [#allocation3], %s918_s14  ;;  %s929_s23 = int_to_ptr.vmem [resolvable:$true] %s525_s23 }
  0x14   : > { %s715_s5 = scalar_lea.vmem (!%p172_p9), %s929_s23, 16  ;;  %s811_s6 = smov (!%p172_p9), [#allocation2]  }
  0x15   : > { %p716_p11 = scmp.ne.s32.totalorder (!%p172_p9), %s929_s23, %s715_s5 }
  0x17   : > { %s201_s7 = scalar_select %p200_p10, %s859_s19, 1 }
  0x18   : > { %p717_p12 = pnand %p716_p11, %p876_p5 }
  0x19   : > { %s670_s8 = smul.u32 24, %s201_s7  ;;  %s719_s7 = sshll.u32 %s811_s6, 4  ;;  %s720_s7 = int_to_ptr.vmem [resolvable:$false] %s719_s7 }
  0x1a   : > { %p718_p13 = pneg %p717_p12  ;;  %p722_p0 = scmp.lt.s32.totalorder %s929_s23, %s720_s7 }
  0x1b   : > { %s204_s11 = scalar_lea.vmem %s1006_s0, %s670_s8  ;;  %s721_s8 = scalar_lea.vmem %s720_s7, 32 }
  0x1c   : > { %v205_v3 = vld [vmem:[%s204_s11] sm:$0xff]  ;;  %v206_v4 = vld [vmem:[%s204_s11 + $0x8] sm:$0xff]  ;;  %p723_p1 = scmp.lt.s32.totalorder %s721_s8, %s715_s5 }
  0x1d   : > { %v208_v5 = vld [vmem:[%s204_s11 + $0x1] sm:$0xff]  ;;  %658 = vmatprep.mubr.msk.f32.mxu0 %vm212_vm1, %v205_v3  ;;  %v209_v6 = vld [vmem:[%s204_s11 + $0x9] sm:$0xff] }
  0x1e   : > { %653 = vmatprep.mubr.msk.f32.mxu1 %vm212_vm1, %v208_v5  ;;  %v382_v7 = vld [vmem:[%s204_s11 + $0x2] sm:$0xff]  ;;  %659 = vmatmul.mubr.msk.f32.vlgmr.msra.gmra.mrb[0].mxu0 %vm212_vm1, %v206_v4  ;;  %v383_v8 = vld [vmem:[%s204_s11 + $0xa] sm:$0xff]  ;;  %p724_p2 = por %p723_p1, %p722_p0 }
  0x1f   : > { %654 = vmatmul.mubr.msk.f32.vlgmr.msra.gmra.mrb[0].mxu1 %vm212_vm1, %v209_v6  ;;  %662 = vmatpush3.msk.msra.mxu0 %vm219_vm0, %v633_v1 }
  0x20   : > { %663 = vmatprep.mubr.msk.f32.mxu0 %vm212_vm1, %v382_v7  ;;  %p725_p3 = pnand %p724_p2, %p718_p13 }
  0x26   : > { %664 = vmatmul.mubr.msk.f32.vlgmr.msra.gmra.mrb[0].mxu0 %vm212_vm1, %v383_v8 }
  0xf2   : > { %v655_v9 = vpop.f32.mrb[0].mxu1 }
  0xf3   : > { %v289_v10 = vpop.f32.mrb[1].mxu1 }
  0xf9   : > { %v665_v11 = vpop.f32.mrb[0].mxu0 }
  0xfa   : > { %v666_v13 = vadd.f32 %v665_v11, %v655_v9  ;;  %v461_v14 = vpop.f32.mrb[1].mxu0 }
  0xfb   : > { %v667_v15 = vadd.f32 %v461_v14, %v289_v10 }
  0xfc   : > { %v480_v16 = vadd.f32 %v666_v13, %v637_v12 }
  0xfd   : > { %v479_v17 = vadd.f32 %v667_v15, %v637_v12 }
  0xfe   : > { %v482_v18 = vsel %vm212_vm1, %v480_v16, 0.0 }
  0xff   : > { %v481_v19 = vsel %vm212_vm1, %v479_v17, 0.0 }
 0x100   : > { %v483_v20 = vadd.f32 %v482_v18, %v481_v19 }
 0x102   : > { %v484_v21 = vrot.slane %v483_v20, 4 }
 0x104   : > { %v485_v22 = vadd.f32 %v484_v21, %v483_v20 }
 0x106   : > { %v486_v23 = vrot.slane %v485_v22, 2 }
 0x108   : > { %v487_v24 = vadd.f32 %v486_v23, %v485_v22 }
 0x10a   : > { %v488_v25 = vrot.slane %v487_v24, 1 }
 0x10c   : > { %v489_v26 = vadd.f32 %v488_v25, %v487_v24 }
 0x10e   : > { %v491_v27 = vmul.f32 0.0625, %v489_v26 }
 0x110   : > { %v492_v28 = vsub.f32 %v479_v17, %v491_v27  ;;  %v493_v29 = vsub.f32 %v480_v16, %v491_v27  ;;  %495 = vst.msk [vmem:[%s193_s22] sm:$0x1] %vm494_vm2, %v491_v27 }
 0x111   : > { %728 = shalt.err (!%p725_p3)
}
 0x112   : > { %s729_s9 = scalar_lea.hbm %s927_s29, 16  ;;  %s733_s12 = scalar_lea.hbm %s1009_s3, 32 }
 0x113   : > { %p730_p4 = scmp.ne.s32.totalorder %s927_s29, %s729_s9  ;;  %p734_p9 = scmp.lt.u32.totalorder %s927_s29, %s1009_s3 }
 0x114   : > { %p735_p10 = scmp.lt.u32.totalorder %s733_s12, %s729_s9  ;;  %p737_p12 = scmp.lt.u32.totalorder %s729_s9, %s927_s29 }
 0x115   : > { %p731_p7 = pnand %p730_p4, %p876_p5 }
 0x116   : > { %p736_p11 = por %p735_p10, %p734_p9 }
 0x117   : > { %p732_p8 = pneg %p731_p7 }
 0x118   : > { %p738_p13 = por %p737_p12, %p736_p11 }
 0x11a   : > { %p739_p0 = pnand %p738_p13, %p732_p8 }
 0x11c   : > { %742 = shalt.err (!%p739_p0)
}
 0x11d   : > { %671 = dma.vmem_to_hbm [thread:$0]  (%p876_p5), %s929_s23, 16, %s927_s29, %s509_s30   ;;  %v496_v30 = vmul.f32 %v492_v28, %v492_v28  ;;  %v497_v31 = vmul.f32 %v493_v29, %v493_v29 }
 0x11e   : > { %s199_s27 = scalar_lea.vmem [#allocation4], %s918_s14  ;;  %s962_s29 = scalar_lea.hbm %s1010_s4, %s638_s20 }
 0x11f   : > { %v498_v32 = vsel %vm212_vm1, %v496_v30, 0.0  ;;  %v499_v33 = vsel %vm212_vm1, %v497_v31, 0.0  ;;  %s538_s28 = sshll.u32 %s199_s27, 4  ;;  %s513_s30 = scalar_lea.sflag [#allocation5], %s918_s14  ;;  %s964_s28 = int_to_ptr.vmem [resolvable:$true] %s538_s28 }
 0x120   : > { %v500_v34 = vadd.f32 %v499_v33, %v498_v32  ;;  %s743_s6 = scalar_lea.vmem %s964_s28, 16  ;;  %s812_s7 = smov [#allocation4]  }
 0x121   : > { %p744_p1 = scmp.ne.s32.totalorder %s964_s28, %s743_s6  ;;  %s747_s19 = sshll.u32 %s812_s7, 4  ;;  %s748_s19 = int_to_ptr.vmem [resolvable:$false] %s747_s19 }
 0x122   : > { %v501_v35 = vrot.slane %v500_v34, 4  ;;  %s749_s8 = scalar_lea.vmem %s748_s19, 32  ;;  %p750_p4 = scmp.lt.s32.totalorder %s964_s28, %s748_s19 }
 0x123   : > { %p745_p2 = pnand %p744_p1, %p876_p5  ;;  %p751_p7 = scmp.lt.s32.totalorder %s749_s8, %s743_s6 }
 0x124   : > { %v502_v36 = vadd.f32 %v501_v35, %v500_v34 }
 0x125   : > { %p746_p3 = pneg %p745_p2  ;;  %p752_p8 = por %p751_p7, %p750_p4 }
 0x126   : > { %v503_v37 = vrot.slane %v502_v36, 2 }
 0x127   : > { %p753_p9 = pnand %p752_p8, %p746_p3 }
 0x128   : > { %v504_v38 = vadd.f32 %v503_v37, %v502_v36 }
 0x12a   : > { %v505_v39 = vrot.slane %v504_v38, 1 }
 0x12c   : > { %v506_v40 = vadd.f32 %v505_v39, %v504_v38 }
 0x12e   : > { %507 = vst.msk [vmem:[%s199_s27] sm:$0x1] %vm494_vm2, %v506_v40 }
 0x12f   : > { %756 = shalt.err (!%p753_p9)
}
 0x130   : > { %s757_s14 = scalar_lea.hbm %s962_s29, 16  ;;  %s761_s10 = scalar_lea.hbm %s1010_s4, 32 }
 0x131   : > { %p758_p10 = scmp.ne.s32.totalorder %s962_s29, %s757_s14  ;;  %p762_p13 = scmp.lt.u32.totalorder %s962_s29, %s1010_s4 }
 0x132   : > { %p763_p0 = scmp.lt.u32.totalorder %s761_s10, %s757_s14  ;;  %p765_p2 = scmp.lt.u32.totalorder %s757_s14, %s962_s29 }
 0x133   : > { %p759_p11 = pnand %p758_p10, %p876_p5 }
 0x134   : > { %p764_p1 = por %p763_p0, %p762_p13 }
 0x135   : > { %p760_p12 = pneg %p759_p11 }
 0x136   : > { %p766_p3 = por %p765_p2, %p764_p1 }
 0x138   : > { %p767_p4 = pnand %p766_p3, %p760_p12 }
 0x13a   : > { %770 = shalt.err (!%p767_p4)
}
 0x13b   : > { %672 = dma.vmem_to_hbm [thread:$0]  (%p876_p5), %s964_s28, 16, %s962_s29, %s513_s30  }
 0x13c PF: > { %p682_p7 = scmp.ge.s32.totalorder %s809_s18, 2  ;;  %s550_s13 = sand.u32 1, %s797_s15  }
 0x13d   : > { %s551_s22 = scalar_lea.sflag [#allocation3], %s550_s13 }
 0x13e   : > { %p676_p8 = pnand %p682_p7, %p880_p6 }
 0x140   : > { %788 = dma.done.wait (!%p676_p8), %s551_s22, 16  }
 0x141   : > { %790 = vsyncadd (!%p676_p8), %s551_s22, 4294967280  ;;  %s559_s27 = scalar_lea.sflag [#allocation5], %s550_s13 }
 0x142   : > { %792 = dma.done.wait (!%p676_p8), %s559_s27, 16  }
 0x143   : > { %794 = vsyncadd (!%p676_p8), %s559_s27, 4294967280  ;;  %p18_p5 = scmp.ge.s32.totalorder %s863_s21, 4   ;;  %s1013_s15 = smov %s801_s16 }
 0x144   : > { %s1014_s16 = smov %s805_s17  ;;  %s1015_s17 = smov %s874_s24 }
 0x145   : > { %s1016_s18 = smov %s863_s21  ;;  %20 = sbr.rel (!%p18_p5) target bundleno = 5 (0x5), region = 86 }
 0x14c   :  { %563 = vsyncpa [#allocation3], 1 }
 0x14d   :  { %565 = vsyncpa [#allocation3 + $0x1], 1 }
 0x14e   :  { %566 = vsyncpa [#allocation5], 1 }
 0x14f   :  { %568 = vsyncpa [#allocation5 + $0x1], 1 }

</bundles_post_ra>
